<compile_context>
chip_gen: v6e
topology: v6e:2x2x1
jax: 0.10.0
libtpu: 0.0.40
codegen_flags: <defaults>
</compile_context>

<pallas_src>
import functools
import math
import random

import numpy as np
import jax
import jax.numpy as jnp
from jax import lax
from jax.experimental import pallas as pl
from jax.experimental.pallas import tpu as pltpu


# ----------------------------------------------------------------------------
# Host-side precompute: nearest-neighbour source index per output pixel.
# ----------------------------------------------------------------------------
def _source_indices_np(angle_deg, H, W, OH, OW):
    """Flattened source index (into H*W) for each output pixel; -1 => fill=0.

    Inverse rotation about the image center followed by a center crop,
    nearest-neighbour resample (matches torchvision's default NEAREST).
    """
    # TODO(synk): PIL/torchvision use w/2, h/2 half-pixel-center conventions
    # and a uint8 round-trip; this uses the (W-1)/2 pixel-grid center and
    # keeps float data, so rotated outputs can differ by <= half a pixel /
    # 1/255 from the PIL reference.
    top = (H - OH) // 2
    left = (W - OW) // 2
    cy = (H - 1) / 2.0
    cx = (W - 1) / 2.0
    theta = math.radians(float(angle_deg))
    cos_t, sin_t = math.cos(theta), math.sin(theta)   # two host scalars, no EUP

    yy = np.arange(OH, dtype=np.float32)[:, None] + top    # (OH, 1)
    xx = np.arange(OW, dtype=np.float32)[None, :] + left   # (1, OW)
    dy = yy - cy
    dx = xx - cx
    src_x = cos_t * dx + sin_t * dy + cx
    src_y = -sin_t * dx + cos_t * dy + cy
    sxi = np.floor(src_x + 0.5).astype(np.int32)
    syi = np.floor(src_y + 0.5).astype(np.int32)
    valid = (sxi >= 0) & (sxi < W) & (syi >= 0) & (syi < H)
    src = np.where(valid,
                   np.clip(syi, 0, H - 1) * W + np.clip(sxi, 0, W - 1),
                   -1)
    return src.reshape(-1).astype(np.int32)                 # (OH*OW,)


# ----------------------------------------------------------------------------
# Kernel 1: rotated resample as a tiled one-hot matmul (shared M, BC rows).
# ----------------------------------------------------------------------------
def _rot_kernel(src_ref, x_ref, o_ref, acc_ref, *, tq, q_base):
    """Grid = (row_blocks over B*C, Q chunks restricted to the active band).

    src_ref: VMEM (1, P_pad) int32 -- shared source index per output pixel (-1 = OOB)
    x_ref:   VMEM (tr, tq)         -- rows = flattened (B*C), cols = source pixels
    o_ref:   VMEM (tr, P_pad)      -- cropped/rotated output rows (lane-dense)
    acc_ref: VMEM (tr, P_pad) f32  -- accumulator across Q chunks
    """
    k = pl.program_id(1)

    @pl.when(k == 0)
    def _init():
        acc_ref[...] = jnp.zeros_like(acc_ref)

    q0 = (k + q_base) * tq
    P_pad = src_ref.shape[1]
    # One-hot selection tile M[q_local, p] = 1 iff source pixel (q0+q_local)
    # feeds output pixel p.  Built once per (row-block, Q-chunk); shared by
    # all BC rows of the block since the angle is shared across the batch.
    q_iota = lax.broadcasted_iota(jnp.int32, (tq, P_pad), 0) + q0
    src = src_ref[...]                                        # (1, P_pad)
    m_tile = jnp.where(q_iota == src, 1.0, 0.0).astype(jnp.bfloat16)   # (tq, P_pad)

    x_tile = x_ref[...].astype(jnp.bfloat16)                  # (tr, tq)
    acc_ref[...] += jnp.dot(x_tile, m_tile, preferred_element_type=jnp.float32)

    @pl.when(k == pl.num_programs(1) - 1)
    def _store():
        o_ref[...] = acc_ref[...].astype(o_ref.dtype)


def _pick_row_tile(bc, p_pad, out_itemsize, budget_bytes=24 * 1024 * 1024):
    """Row tile over B*C, sized so acc (f32) + double-buffered out rows fit budget."""
    per_row = p_pad * (4 + 2 * out_itemsize)
    cap = int(budget_bytes // max(per_row, 1))
    cap = max(8, min(cap, 1024))
    if bc <= cap:
        return bc
    t = cap - cap % 8
    while t >= 8:
        if bc % t == 0:
            return t
        t -= 8
    return bc     # no multiple-of-8 divisor <= cap; fall back to full BC


def _pick_q_tile(Q, P_pad, m_tile_budget_bytes=8 * 1024 * 1024):
    """Largest Q tile (multiple of 128, dividing Q) whose bf16 M tile fits the budget."""
    if Q * P_pad * 2 <= m_tile_budget_bytes:
        return Q
    max_tq = max(128, (m_tile_budget_bytes // (2 * P_pad)) // 128 * 128)
    tq = min(max_tq, (Q // 128) * 128)
    tq = max(tq, 128)
    while tq >= 128:
        if Q % tq == 0:
            return tq
        tq -= 128
    return Q


def _rotated_crop_pallas(x, angle_deg, size, q_tile=None, row_tile=None):
    B, C, H, W = x.shape
    OH, OW = size
    assert OH <= H and OW <= W
    Q, P = H * W, OH * OW
    BC = B * C

    # Host precompute (numpy): NN source indices, padded to a lane-dense width.
    src_np = _source_indices_np(angle_deg, H, W, OH, OW)      # (P,)
    P_pad = max(128, ((P + 127) // 128) * 128)
    src_pad = np.full((1, P_pad), -1, dtype=np.int32)
    src_pad[0, :P] = src_np
    src_flat = jnp.asarray(src_pad)

    x_rows = x.reshape(BC, Q)      # fold batch*channel into MXU rows (free reshape)

    tr = row_tile if row_tile is not None else _pick_row_tile(BC, P_pad, x.dtype.itemsize)
    tq = q_tile if q_tile is not None else _pick_q_tile(Q, P_pad)
    assert BC % tr == 0 and Q % tq == 0

    # Restrict the Q reduction to the band of source pixels that contribute.
    valid = src_np[src_np >= 0]
    if valid.size == 0:            # crop fully outside the rotated source (degenerate)
        return jnp.zeros((B, C, OH, OW), x.dtype)
    q_lo = int(valid.min())
    q_hi = int(valid.max()) + 1
    k_base = q_lo // tq
    n_k = -(-q_hi // tq) - k_base  # ceil(q_hi / tq) - k_base

    grid = (BC // tr, n_k)
    kernel = functools.partial(_rot_kernel, tq=tq, q_base=k_base)

    out_rows = pl.pallas_call(
        kernel,
        out_shape=jax.ShapeDtypeStruct((BC, P_pad), x.dtype),
        grid_spec=pltpu.PrefetchScalarGridSpec(
            num_scalar_prefetch=0,
            grid=grid,
            in_specs=[
                pl.BlockSpec((1, P_pad), lambda r, k: (0, 0)),          # shared src indices
                pl.BlockSpec((tr, tq), lambda r, k: (r, k + k_base)),   # x row-block / Q-chunk
            ],
            out_specs=pl.BlockSpec((tr, P_pad), lambda r, k: (r, 0)),
            scratch_shapes=[pltpu.VMEM((tr, P_pad), jnp.float32)],
        ),
        compiler_params=pltpu.CompilerParams(
            dimension_semantics=("parallel", "arbitrary"),
            vmem_limit_bytes=48 * 1024 * 1024,
        ),
        cost_estimate=pl.CostEstimate(
            flops=2 * BC * (n_k * tq) * P_pad,
            transcendentals=0,
            bytes_accessed=BC * (n_k * tq) * x.dtype.itemsize
                           + BC * P_pad * x.dtype.itemsize,
        ),
    )(src_flat, x_rows)

    return out_rows[:, :P].reshape(B, C, OH, OW)


# ----------------------------------------------------------------------------
# Kernel 2: fast path -- plain center crop (no M, no matmul, pure copy).
# ----------------------------------------------------------------------------
def _crop_kernel(x_ref, o_ref, *, top, left, OH, OW):
    img = x_ref[0, 0]                                         # (H, W)
    o_ref[0, 0] = lax.slice(img, (top, left), (top + OH, left + OW))


def center_crop(x, size):
    B, C, H, W = x.shape
    OH, OW = size
    top = (H - OH) // 2
    left = (W - OW) // 2
    kernel = functools.partial(_crop_kernel, top=top, left=left, OH=OH, OW=OW)
    return pl.pallas_call(
        kernel,
        out_shape=jax.ShapeDtypeStruct((B, C, OH, OW), x.dtype),
        grid_spec=pltpu.PrefetchScalarGridSpec(
            num_scalar_prefetch=0,
            grid=(B, C),
            in_specs=[pl.BlockSpec((1, 1, H, W), lambda b, c: (b, c, 0, 0))],
            out_specs=pl.BlockSpec((1, 1, OH, OW), lambda b, c: (b, c, 0, 0)),
        ),
        compiler_params=pltpu.CompilerParams(
            dimension_semantics=("parallel", "parallel")),
    )(x)


# ----------------------------------------------------------------------------
# Public API
# ----------------------------------------------------------------------------
def rotated_center_crop(x, angle_deg, size, q_tile=None):
    """x: (B, C, H, W).  Rotate by angle_deg about center (NN), then center-crop."""
    OH, OW = size
    if float(angle_deg) == 0.0:
        return center_crop(x, (OH, OW))        # pure copy, skip the matmul path
    return _rotated_crop_pallas(x, float(angle_deg), (OH, OW), q_tile=q_tile)


class RandomRotatedCrop:
    """Mirrors utils/augmentations.RandomRotatedCrop.

    Host-side Python randomness (random.random / random.randint) stays on the
    host, seeded deterministically.  The (1-p) branch is a plain blocked-copy
    center crop; the p branch rotates by a shared random angle then crops.
    """

    # TODO(synk): the reference's PIL uint8 round-trip (to_pil_image/to_tensor)
    # quantizes values to 1/255 steps in the rotated branch; not reproduced.

    def __init__(self, size, p: float = 0.5, seed: int = 0):
        self.p = p
        self.size = tuple(size) if isinstance(size, (tuple, list)) else (size, size)
        self._rng = random.Random(seed)

    def __call__(self, x):
        if self._rng.random() > self.p:
            return center_crop(x, self.size)                  # no rotation
        angle = float(self._rng.randint(-90, 90))
        return rotated_center_crop(x, angle, self.size)


# ----------------------------------------------------------------------------
# Pure-JAX reference for the rotated path (same NN convention, same bf16 quant).
# ----------------------------------------------------------------------------
def _reference_rotate_crop(x, angle_deg, size):
    B, C, H, W = x.shape
    OH, OW = size
    src = jnp.asarray(_source_indices_np(angle_deg, H, W, OH, OW))   # (P,)
    xq = x.astype(jnp.bfloat16).astype(jnp.float32).reshape(B, C, H * W)
    gathered = jnp.take(xq, jnp.maximum(src, 0), axis=-1)            # (B, C, P)
    gathered = jnp.where(src[None, None, :] >= 0, gathered, 0.0)
    return gathered.reshape(B, C, OH, OW).astype(x.dtype)


if __name__ == "__main__":
    key = jax.random.PRNGKey(0)
    B, C, H, W = 2, 4, 16, 16
    x = jax.random.uniform(key, (B, C, H, W), dtype=jnp.float32)

    # Module with host randomness (deterministic seed).
    aug = RandomRotatedCrop(8, p=0.5, seed=0)
    out = jax.block_until_ready(aug(x))
    assert out.shape == (B, C, 8, 8), out.shape

    # angle == 0 path: exact center crop through the Pallas crop kernel.
    out0 = jax.block_until_ready(rotated_center_crop(x, 0.0, (8, 8)))
    ref0 = x[:, :, 4:12, 4:12]
    assert jnp.array_equal(out0, ref0), "center-crop path mismatch"

    # Rotated path (single Q chunk over the active source band).
    angle = 37.0
    out_rot = jax.block_until_ready(rotated_center_crop(x, angle, (8, 8)))
    ref_rot = _reference_rotate_crop(x, angle, (8, 8))
    assert out_rot.shape == (B, C, 8, 8)
    assert jnp.allclose(out_rot, ref_rot, atol=1e-5, rtol=1e-5), float(
        jnp.max(jnp.abs(out_rot - ref_rot)))

    # Rotated path again, forcing multiple Q chunks to exercise the
    # reduction-axis accumulator (pl.when init / store) and the band offset.
    out_rot2 = jax.block_until_ready(
        rotated_center_crop(x, angle, (8, 8), q_tile=128))
    assert jnp.allclose(out_rot2, ref_rot, atol=1e-5, rtol=1e-5), float(
        jnp.max(jnp.abs(out_rot2 - ref_rot)))

    # A second angle (negative) for extra coverage of the index precompute.
    out_rot3 = jax.block_until_ready(rotated_center_crop(x, -63.0, (8, 8)))
    ref_rot3 = _reference_rotate_crop(x, -63.0, (8, 8))
    assert jnp.allclose(out_rot3, ref_rot3, atol=1e-5, rtol=1e-5)

    print("KERNEL_OK")
</pallas_src>

<mosaic_0001>
module attributes {stable_mosaic.version = 11 : i64} {
  func.func @_crop_kernel(%arg0: i32, %arg1: i32, %arg2: memref<1x1x16x16xf32, #tpu.memory_space<vmem>>, %arg3: memref<1x1x8x8xf32, #tpu.memory_space<vmem>>) attributes {dimension_semantics = [#tpu.dimension_semantics<parallel>, #tpu.dimension_semantics<parallel>], iteration_bounds = array<i64: 2, 4>, scalar_prefetch = 0 : i64, scratch_operands = 0 : i64, tpu.core_type = #tpu.core_type<tc>, window_params = [{transform_indices = @transform_0, window_bounds = array<i64: 1, 1, 16, 16>}, {transform_indices = @transform_1, window_bounds = array<i64: 1, 1, 8, 8>}]} {
    %c0 = arith.constant 0 : index
    %c0_0 = arith.constant 0 : index
    %c0_1 = arith.constant 0 : index
    %c0_2 = arith.constant 0 : index
    %0 = vector.load %arg2[%c0, %c0_0, %c0_1, %c0_2] : memref<1x1x16x16xf32, #tpu.memory_space<vmem>>, vector<1x1x16x16xf32>
    %1 = vector.shape_cast %0 : vector<1x1x16x16xf32> to vector<16x16xf32>
    %2 = vector.extract_strided_slice %1 {offsets = [4, 4], sizes = [8, 8], strides = [1, 1]} : vector<16x16xf32> to vector<8x8xf32>
    %c0_3 = arith.constant 0 : index
    %c0_4 = arith.constant 0 : index
    %c0_5 = arith.constant 0 : index
    %c0_6 = arith.constant 0 : index
    %3 = vector.load %arg3[%c0_3, %c0_4, %c0_5, %c0_6] : memref<1x1x8x8xf32, #tpu.memory_space<vmem>>, vector<1x1x8x8xf32>
    %4 = vector.shape_cast %3 : vector<1x1x8x8xf32> to vector<8x8xf32>
    %5 = vector.shape_cast %2 : vector<8x8xf32> to vector<1x1x8x8xf32>
    tpu.vector_store %arg3[%c0_3, %c0_4, %c0_5, %c0_6], %5 {strides = array<i32>} : memref<1x1x8x8xf32, #tpu.memory_space<vmem>>, vector<1x1x8x8xf32>,
    return
  }
  func.func @transform_0(%arg0: i32, %arg1: i32) -> (i32, i32, i32, i32) {
    %c0_i32 = arith.constant 0 : i32
    %c0_i32_0 = arith.constant 0 : i32
    %c0_i32_1 = arith.constant 0 : i32
    return %arg0, %arg1, %c0_i32, %c0_i32_0 : i32, i32, i32, i32
  }
  func.func @transform_1(%arg0: i32, %arg1: i32) -> (i32, i32, i32, i32) {
    %c0_i32 = arith.constant 0 : i32
    %c0_i32_0 = arith.constant 0 : i32
    %c0_i32_1 = arith.constant 0 : i32
    return %arg0, %arg1, %c0_i32, %c0_i32_0 : i32, i32, i32, i32
  }
}

</mosaic_0001>

<bundles_post_ra>
// kernel: tpu_custom_call.1
= control target key start
LH: loop header
LB: loop body
LE: loop exit
PB: predicated region body
PF: predicated region fallthrough
CT: control target
= control target key end

     0   :  { %6 = vsyncpa [#allocation3], 0  ;;  %s666_s0 = inlined_call_operand.hbm [shape: f32[2,4,16,16], index: 0, kind: input, shape index: {}]   ;;  %s667_s1 = inlined_call_operand.hbm [shape: f32[2,4,8,8], index: 1, kind: output, shape index: {}]  }
   0x1   :  { %8 = vsyncpa [#allocation3 + $0x1], 0 }
   0x2   :  { %9 = vsyncpa [#allocation4], 0 }
   0x3   :  { %11 = vsyncpa [#allocation4 + $0x1], 0  ;;  %s507_s6 = smov 0   ;;  %s509_s7 = smov 0  }
   0x4   :  { %s511_s8 = smov 0   ;;  %s513_s9 = smov 0  }
   0x5   :  { %s515_s10 = smov 0   ;;  %s517_s11 = smov 0  }
   0x6   :  { %s519_s12 = smov 0   ;;  %s521_s13 = smov 0  }
   0x7 LB: > { %s269_s14 = sadd.s32 4294967295, %s490_s13   ;;  %s270_s15 = sadd.s32 4294967294, %s490_s13   ;;  %s490_s13 = sphi %s521_s13, %s17_s13   ;;  %s486_s12 = sphi %s519_s12, %s679_s12   ;;  %s482_s11 = sphi %s517_s11, %s678_s11   ;;  %s478_s10 = sphi %s515_s10, %s677_s10   ;;  %s474_s9 = sphi %s513_s9, %s676_s9   ;;  %s470_s8 = sphi %s511_s8, %s675_s8   ;;  %s466_s7 = sphi %s509_s7, %s674_s7   ;;  %s462_s6 = sphi %s507_s6, %s673_s6  }
   0x8   : > { %s26_s16 = sadd.s32 1, %s482_s11  ;;  %s29_s17 = sadd.s32 1, %s486_s12 }
   0x9   : > { %p27_p0 = scmp.ge.s32.totalorder %s26_s16, 4  ;;  %s38_s18 = sadd.s32 1, %s470_s8 }
   0xa   : > { %p45_p1 = scmp.ne.s32.totalorder %s470_s8, %s466_s7  ;;  %p46_p2 = scmp.eq.s32.totalorder %s490_s13, 0 }
   0xb   : > { %s681_s16 = smov (%p27_p0, %s26_s16), 0  ;;  %s683_s17 = smov (!%p27_p0, %s29_s17), %s486_s12 }
   0xc   : > { %s34_s19 = ssub.s32 %s482_s11, %s681_s16  ;;  %p560_p3 = por %p46_p2, %p45_p1 }
   0xd   : > { %p31_p4 = scmp.ge.s32.totalorder %s683_s17, 2  ;;  %p51_p5 = scmp.ne.s32.totalorder %s466_s7, %s462_s6 }
   0xe   : > { %p52_p6 = scmp.eq.s32.totalorder %s269_s14, 0  ;;  %p77_p7 = scmp.eq.s32.totalorder %s269_s14, 7 }
   0xf   : > { %s685_s17 = smov (%p31_p4, %s683_s17), 0  ;;  %p83_p10 = scmp.eq.s32.totalorder %s270_s15, 7 }
  0x10   : > { %p568_p8 = por %p52_p6, %p51_p5  ;;  %p572_p9 = por %p77_p7, %p45_p1 }
  0x11   : > { %s33_s23 = ssub.s32 %s486_s12, %s685_s17  ;;  %p578_p12 = por %p83_p10, %p51_p5 }
  0x12   : > { %s35_s24 = sor.u32 %s34_s19, %s33_s23  ;;  %p297_p13 = scmp.lt.s32.totalorder %s490_s13, 8 }
  0x13   : > { %p36_p11 = scmp.eq.s32.totalorder %s35_s24, 0  ;;  %s103_s26 = sand.u32 1, %s470_s8  }
  0x14   : > { %s273_s28 = sshll.u32 %s103_s26, 4  ;;  %s274_s29 = sshll.u32 %s482_s11, 1 }
  0x15   : > { %s585_s27 = scalar_select %p36_p11, %s470_s8, %s38_s18  }
  0x16   : > { %s275_s30 = sshll.u32 %s486_s12, 3  ;;  %s107_s2 = scalar_lea.vmem [#allocation2], %s273_s28 }
  0x17   : > { %s116_s3 = sshll.u32 %s107_s2, 4  ;;  %s113_s4 = sadd.s32 %s275_s30, %s274_s29  ;;  %s117_s3 = int_to_ptr.vmem [resolvable:$true] %s116_s3 }
  0x18   : > { %s276_s5 = sshll.u32 %s113_s4, 7  ;;  %p591_p0 = pnand %p297_p13, %p560_p3 }
  0x19   : > { %s115_s23 = scalar_lea.hbm %s666_s0, %s276_s5  ;;  %s104_s18 = scalar_lea.sflag [#allocation3], %s103_s26 }
  0x1a   : > { %p368_p1 = pneg %p591_p0  ;;  %s379_s24 = scalar_lea.vmem %s117_s3, 256 }
  0x1b   : > { %p380_p2 = scmp.ne.s32.totalorder %s117_s3, %s379_s24  ;;  %s492_s28 = smov [#allocation2]  }
  0x1c   : > { %s384_s29 = sshll.u32 %s492_s28, 4  ;;  %s385_s29 = int_to_ptr.vmem [resolvable:$false] %s384_s29 }
  0x1d   : > { %p382_p4 = pnand %p380_p2, %p368_p1  ;;  %s386_s20 = scalar_lea.vmem %s385_s29, 512 }
  0x1e   : > { %p387_p3 = scmp.lt.s32.totalorder %s117_s3, %s385_s29  ;;  %p388_p6 = scmp.lt.s32.totalorder %s386_s20, %s379_s24 }
  0x1f   : > { %p383_p5 = pneg %p382_p4 }
  0x20   : > { %p389_p7 = por %p388_p6, %p387_p3 }
  0x22   : > { %p390_p10 = pnand %p389_p7, %p383_p5 }
  0x24   : > { %393 = shalt.err (!%p390_p10)
}
  0x25   : > { %s493_s30 = smov 128   ;;  %s494_s26 = smov 8  }
  0x26   : > { %292 = dma.hbm_to_vmem [thread:$0]  (!%p591_p0), %s115_s23, 256, %s117_s3, %s104_s18, %s493_s30, %s493_s30, %s494_s26  }
  0x27   : > { %p277_p11 = scmp.ge.s32.totalorder %s490_s13, 1  ;;  %p124_p13 = scmp.lt.s32.totalorder %s490_s13, 9 }
  0x29   : > { %p125_p1 = pnand %p277_p11, %p124_p13 }
  0x2a   : > { %s605_s2 = sand.u32 (!%p125_p1), 1, %s466_s7  }
  0x2b   : > { %128 = sbr.rel (%p125_p1) target bundleno = 182 (0xb6), region = 24  ;;  %s278_s4 = sshll.u32 (!%p125_p1), %s605_s2, 4 }
  0x2c   : > { %s131_s5 = scalar_lea.sflag (!%p125_p1), [#allocation3], %s605_s2  ;;  %s134_s15 = scalar_lea.vmem (!%p125_p1), [#allocation2], %s278_s4 }
  0x30   : > { %453 = dma.done.wait (%p568_p8), %s131_s5, 256  }
  0x31   : > { %455 = vsyncadd (%p568_p8), %s131_s5, 4294967040  ;;  %v153_v0 = vld [vmem:[%s134_s15] sm:$0xff]  ;;  %s495_s3 = smov 124   ;;  %v154_v1 = vld [vmem:[%s134_s15 + $0x8] sm:$0xff]  ;;  %s281_s14 = sshll.u32 %s478_s10, 2  ;;  %vm163_vm0 = vcmask 64516  }
  0x32   : > { %157 = vrot.lane.b32.xlu0 %v153_v0, %s495_s3  ;;  %s279_s19 = sshll.u32 %s605_s2, 3  ;;  %s179_s23 = sadd.s32 %s474_s9, %s281_s14  ;;  %vm165_vm1 = vcmask 60416  }
  0x33   : > { %s282_s18 = sshll.u32 %s179_s23, 7  ;;  %s152_s24 = scalar_lea.vmem [#allocation5], %s279_s19 }
  0x34   : > { %s183_s28 = sshll.u32 %s152_s24, 4  ;;  %s619_s20 = scalar_lea.hbm %s667_s1, %s282_s18  ;;  %s184_s28 = int_to_ptr.vmem [resolvable:$true] %s183_s28 }
  0x35   : > { %s168_s30 = scalar_lea.sflag [#allocation4], %s605_s2  ;;  %s394_s10 = scalar_lea.vmem %s184_s28, 128 }
  0x36   : > { %159 = vrot.lane.b32.xlu0 %v154_v1, %s495_s3  ;;  %p395_p8 = scmp.ne.s32.totalorder %s184_s28, %s394_s10  ;;  %s496_s9 = smov [#allocation5]  }
  0x37   : > { %s398_s26 = sshll.u32 %s496_s9, 4  ;;  %s399_s26 = int_to_ptr.vmem [resolvable:$false] %s398_s26 }
  0x38   : > { %p396_p0 = pnand %p395_p8, %p572_p9  ;;  %s400_s4 = scalar_lea.vmem %s399_s26, 256 }
  0x39   : > { %p401_p4 = scmp.lt.s32.totalorder %s184_s28, %s399_s26  ;;  %p402_p5 = scmp.lt.s32.totalorder %s400_s4, %s394_s10 }
  0x3a   : > { %p397_p2 = pneg %p396_p0 }
  0x3b   : > { %p403_p3 = por %p402_p5, %p401_p4 }
  0x3d   : > { %p404_p6 = pnand %p403_p3, %p397_p2 }
  0xa4   : > { %v158_v2 = vpop.permute.xlu0 %157 }
  0xa5   : > { %164 = vst.msk [vmem:[%s152_s24 - $0x4] sm:$0xf0] %vm163_vm0, %v158_v2 }
  0xa8   : > { %v160_v3 = vpop.permute.xlu0 %159 }
  0xa9   : > { %166 = vst.msk [vmem:[%s152_s24 + $0x4] sm:$0xf] %vm165_vm1, %v160_v3 }
  0xaa   : > { %407 = shalt.err (!%p404_p6)
}
  0xab   : > { %s408_s5 = scalar_lea.hbm %s619_s20, 128  ;;  %s412_s3 = scalar_lea.hbm %s667_s1, 1024 }
  0xac   : > { %p409_p7 = scmp.ne.s32.totalorder %s619_s20, %s408_s5  ;;  %p413_p13 = scmp.lt.s32.totalorder %s619_s20, %s667_s1 }
  0xad   : > { %p414_p1 = scmp.lt.s32.totalorder %s412_s3, %s408_s5 }
  0xae   : > { %p410_p10 = pnand %p409_p7, %p572_p9 }
  0xaf   : > { %p415_p8 = por %p414_p1, %p413_p13 }
  0xb0   : > { %p411_p11 = pneg %p410_p10 }
  0xb2   : > { %p416_p0 = pnand %p415_p8, %p411_p11 }
  0xb4   : > { %419 = shalt.err (!%p416_p0)
}
  0xb5   : > { %287 = dma.vmem_to_hbm [thread:$0]  (%p572_p9), %s184_s28, 128, %s619_s20, %s168_s30  }
  0xb6 PF: > { %p298_p2 = scmp.ge.s32.totalorder %s490_s13, 2  ;;  %s195_s23 = sand.u32 1, %s462_s6  }
  0xb7   : > { %s196_s18 = scalar_lea.sflag [#allocation4], %s195_s23 }
  0xb8   : > { %p294_p4 = pnand %p298_p2, %p578_p12 }
  0xba   : > { %p295_p5 = pneg %p294_p4 }
  0xbc   : > { %457 = dma.done.wait (%p295_p5), %s196_s18, 128  }
  0xbd   : > { %459 = vsyncadd (%p295_p5), %s196_s18, 4294967168  ;;  %s17_s13 = sadd.s32 1, %s490_s13   ;;  %s673_s6 = smov %s466_s7 }
  0xbe   : > { %p14_p3 = scmp.ge.s32.totalorder %s17_s13, 10   ;;  %s674_s7 = smov %s470_s8 }
  0xbf   : > { %s675_s8 = smov %s585_s27  ;;  %s676_s9 = smov %s482_s11 }
  0xc0   : > { %s677_s10 = smov %s486_s12  ;;  %s678_s11 = smov %s681_s16 }
  0xc1   : > { %s679_s12 = smov %s685_s17  ;;  %16 = sbr.rel (!%p14_p3) target bundleno = 7 (0x7), region = 69 }
  0xc6   :  { %201 = vsyncpa [#allocation3], 1 }
  0xc7   :  { %203 = vsyncpa [#allocation3 + $0x1], 1 }
  0xc8   :  { %204 = vsyncpa [#allocation4], 1 }
  0xc9   :  { %206 = vsyncpa [#allocation4 + $0x1], 1 }

</bundles_post_ra>
